<compile_context>
chip_gen: v7x
topology: tpu7x:2x2x1
jax: 0.10.0
libtpu: 0.0.40
codegen_flags: <defaults>
</compile_context>

<pallas_src>
import functools

import jax
import jax.numpy as jnp
from jax.experimental import pallas as pl
from jax.experimental.pallas import tpu as pltpu


# ----------------------------- Pallas kernel ------------------------------ #
def _cross_conv_kernel(x_ref, w1_ref, b1_ref, w2_ref, b2_ref, o_ref, *,
                       W, K, tile_n, add_shortcut, compute_dtype):
    # x_ref:  [tile_n, C1, H*W]   flattened NCHW image block
    # w1_ref: [K, C_, C1]         cv1 taps, BN1 scale folded in, [Cout, Cin]
    # b1_ref: [C_, 1]             folded BN1 bias
    # w2_ref: [K, C2, C_]         cv2 taps, BN2 scale folded in
    # b2_ref: [C2, 1]             folded BN2 bias
    # o_ref:  [tile_n, C2, H*W]
    C1 = x_ref.shape[1]
    Cm = w1_ref.shape[1]
    HW = x_ref.shape[2]
    pad = K // 2

    # Boundary masks, hoisted out of the per-image loop (broadcasts are not
    # CSE'd by JAX).  Flattened index i = h*W + w.
    col1 = jax.lax.broadcasted_iota(jnp.int32, (C1, HW), 1)
    col2 = jax.lax.broadcasted_iota(jnp.int32, (Cm, HW), 1)
    w_idx = col1 % W
    masks_w = {o: (w_idx + o >= 0) & (w_idx + o < W)
               for o in range(-pad, pad + 1) if o != 0}
    masks_h = {o: (col2 + o * W >= 0) & (col2 + o * W < HW)
               for o in range(-pad, pad + 1) if o != 0}

    for b in range(tile_n):                     # static, small unroll
        x_raw = x_ref[b]                        # [C1, HW]
        xb = x_raw.astype(compute_dtype)

        # ---- cv1: (1,K) conv along W, folded BN + LeakyReLU(0.1) ---------- #
        acc1 = None
        for dx in range(K):
            o = dx - pad                        # source column offset
            if o == 0:
                xs = xb
            else:
                # rolled[i] = xb[(i + o) mod HW]; mask kills out-of-row taps.
                xs = pltpu.roll(xb, shift=(-o) % HW, axis=1)
                xs = jnp.where(masks_w[o], xs, 0)
            part = jnp.dot(w1_ref[dx], xs,
                           preferred_element_type=jnp.float32)   # [C_, HW]
            acc1 = part if acc1 is None else acc1 + part
        y1 = acc1 + b1_ref[...]
        y1 = jnp.where(y1 > 0, y1, 0.1 * y1).astype(compute_dtype)  # [C_, HW]

        # ---- cv2: (K,1) conv along H, folded BN + LeakyReLU(0.1) ---------- #
        acc2 = None
        for dy in range(K):
            o = dy - pad                        # source row offset
            if o == 0:
                ys = y1
            else:
                ys = pltpu.roll(y1, shift=(-o * W) % HW, axis=1)
                ys = jnp.where(masks_h[o], ys, 0)
            part = jnp.dot(w2_ref[dy], ys,
                           preferred_element_type=jnp.float32)   # [C2, HW]
            acc2 = part if acc2 is None else acc2 + part
        out = acc2 + b2_ref[...]
        out = jnp.where(out > 0, out, 0.1 * out)

        if add_shortcut:                        # fused residual (c1 == c2)
            out = out + x_raw.astype(jnp.float32)

        o_ref[b] = out.astype(o_ref.dtype)


# ------------------------------ CrossConv --------------------------------- #
def cross_conv_forward(x, params, *, k=3, shortcut=False,
                       compute_dtype=jnp.bfloat16):
    """x: [N, C1, H, W] (NCHW, matching PyTorch). Stride 1, groups 1, odd k."""
    N, C1, H, W = x.shape
    HW = H * W
    assert k % 2 == 1, "only odd kernel sizes are supported"
    w1, s1, b1 = params["w1"], params["scale1"], params["bias1"]
    w2, s2, b2 = params["w2"], params["scale2"], params["bias2"]
    K, _, C_ = w1.shape
    C2 = w2.shape[-1]
    assert K == k
    add = bool(shortcut) and (C1 == C2)

    # Fold BN scale into the conv weights (host side) and pre-transpose to
    # [K, Cout, Cin]; biases stay in f32.
    w1f = (jnp.transpose(w1, (0, 2, 1)) * s1[None, :, None]).astype(compute_dtype)
    w2f = (jnp.transpose(w2, (0, 2, 1)) * s2[None, :, None]).astype(compute_dtype)
    b1f = b1.reshape(C_, 1).astype(jnp.float32)
    b2f = b2.reshape(C2, 1).astype(jnp.float32)

    xf = x.reshape(N, C1, HW)                   # free (row-major) reshape

    # Batch tile: biggest divisor of N whose double-buffered in+out blocks fit
    # a conservative budget (works for v5e/v6e 128 MiB and v7x 64 MiB VMEM),
    # capped to keep the in-kernel unroll small.
    dsize = jnp.dtype(x.dtype).itemsize
    per_img = (C1 + C2) * HW * dsize
    tile_n = 1
    for t in range(1, min(N, 8) + 1):
        if N % t == 0 and 2 * t * per_img <= (8 << 20):
            tile_n = t

    wdsize = jnp.dtype(compute_dtype).itemsize
    wbytes = (w1f.size + w2f.size) * wdsize + (b1f.size + b2f.size) * 4
    vmem_limit = int(min(32 << 20,
                         max(4 << 20, 3 * tile_n * per_img + wbytes + (1 << 20))))

    kernel = functools.partial(
        _cross_conv_kernel, W=W, K=K, tile_n=tile_n,
        add_shortcut=add, compute_dtype=compute_dtype)

    # NOTE: the K taps could be folded into a single K*Cin-deep contraction for
    # better MXU fill; kept as K small matmuls here since Cin is tiny and the
    # sublane concat would force a relayout.
    out = pl.pallas_call(
        kernel,
        out_shape=jax.ShapeDtypeStruct((N, C2, HW), x.dtype),
        grid_spec=pltpu.PrefetchScalarGridSpec(
            num_scalar_prefetch=0,
            grid=(N // tile_n,),
            in_specs=[
                pl.BlockSpec((tile_n, C1, HW), lambda i: (i, 0, 0)),
                pl.BlockSpec((K, C_, C1), lambda i: (0, 0, 0)),
                pl.BlockSpec((C_, 1), lambda i: (0, 0)),
                pl.BlockSpec((K, C2, C_), lambda i: (0, 0, 0)),
                pl.BlockSpec((C2, 1), lambda i: (0, 0)),
            ],
            out_specs=pl.BlockSpec((tile_n, C2, HW), lambda i: (i, 0, 0)),
        ),
        compiler_params=pltpu.CompilerParams(
            dimension_semantics=("parallel",),
            vmem_limit_bytes=vmem_limit),
    )(xf, w1f, b1f, w2f, b2f)

    return out.reshape(N, C2, H, W)


# ------------------------ deterministic parameters ------------------------- #
def make_params(key, c1, c2, k=3, e=1.0):
    c_ = int(c2 * e)
    ks = jax.random.split(key, 8)
    eps = 1e-5

    def bn_fold(kg, kb, km, kv, c):
        gamma = 1.0 + 0.1 * jax.random.normal(kg, (c,), jnp.float32)
        beta = 0.1 * jax.random.normal(kb, (c,), jnp.float32)
        mean = 0.1 * jax.random.normal(km, (c,), jnp.float32)
        var = 1.0 + 0.5 * jnp.abs(jax.random.normal(kv, (c,), jnp.float32))
        scale = gamma / jnp.sqrt(var + eps)
        bias = beta - mean * scale
        return scale, bias

    # conv weights stored as [K, Cin, Cout] (torch Conv2d weight is [Cout,Cin,kh,kw])
    w1 = 0.3 * jax.random.normal(ks[0], (k, c1, c_), jnp.float32)
    w2 = 0.3 * jax.random.normal(ks[1], (k, c_, c2), jnp.float32)
    scale1, bias1 = bn_fold(ks[2], ks[3], ks[4], ks[5], c_)
    scale2, bias2 = bn_fold(ks[6], ks[7], ks[2], ks[3], c2)
    return dict(w1=w1, scale1=scale1, bias1=bias1,
                w2=w2, scale2=scale2, bias2=bias2)


# --------------------------- pure-JAX reference ---------------------------- #
def _ref_conv_bn_act(x, w_oihw, scale, bias, padding):
    y = jax.lax.conv_general_dilated(
        x, w_oihw, window_strides=(1, 1), padding=padding,
        dimension_numbers=("NCHW", "OIHW", "NCHW"))
    y = y * scale[None, :, None, None] + bias[None, :, None, None]
    return jnp.where(y > 0, y, 0.1 * y)


def ref_cross_conv(x, params, k=3):
    pad = k // 2
    w1 = jnp.transpose(params["w1"], (2, 1, 0))[:, :, None, :]  # [c_, c1, 1, k]
    w2 = jnp.transpose(params["w2"], (2, 1, 0))[:, :, :, None]  # [c2, c_, k, 1]
    y = _ref_conv_bn_act(x, w1, params["scale1"], params["bias1"],
                         [(0, 0), (pad, pad)])
    y = _ref_conv_bn_act(y, w2, params["scale2"], params["bias2"],
                         [(pad, pad), (0, 0)])
    return y


# ---------------------------------- main ----------------------------------- #
if __name__ == "__main__":
    key = jax.random.PRNGKey(0)
    kx, kp = jax.random.split(key)

    N, C1, C2, H, W, K = 2, 4, 4, 16, 16, 3
    x = jax.random.normal(kx, (N, C1, H, W), jnp.float32)
    params = make_params(kp, C1, C2, k=K, e=1.0)

    ref = jax.block_until_ready(ref_cross_conv(x, params, k=K))

    # Strict-precision path (f32 MXU operands) — tight tolerance.
    fwd_f32 = jax.jit(functools.partial(
        cross_conv_forward, k=K, shortcut=False, compute_dtype=jnp.float32))
    out_f32 = jax.block_until_ready(fwd_f32(x, params))
    assert out_f32.shape == (N, C2, H, W)
    assert jnp.allclose(out_f32, ref, rtol=1e-4, atol=1e-4), "f32 mismatch"

    # Fast path: bf16 MXU operands, f32 accumulation — loose tolerance.
    fwd_bf16 = jax.jit(functools.partial(
        cross_conv_forward, k=K, shortcut=False, compute_dtype=jnp.bfloat16))
    out_bf16 = jax.block_until_ready(fwd_bf16(x, params))
    assert jnp.allclose(out_bf16, ref, rtol=1e-1, atol=1e-1), "bf16 mismatch"

    # Fused residual shortcut (c1 == c2).
    fwd_sc = jax.jit(functools.partial(
        cross_conv_forward, k=K, shortcut=True, compute_dtype=jnp.float32))
    out_sc = jax.block_until_ready(fwd_sc(x, params))
    assert jnp.allclose(out_sc, ref + x, rtol=1e-4, atol=1e-4), "shortcut mismatch"

    print("KERNEL_OK")
</pallas_src>

<mosaic_0001>
module attributes {stable_mosaic.version = 11 : i64} {
  func.func @_cross_conv_kernel(%arg0: i32, %arg1: memref<2x4x256xf32, #tpu.memory_space<vmem>>, %arg2: memref<3x4x4xf32, #tpu.memory_space<vmem>>, %arg3: memref<4x1xf32, #tpu.memory_space<vmem>>, %arg4: memref<3x4x4xf32, #tpu.memory_space<vmem>>, %arg5: memref<4x1xf32, #tpu.memory_space<vmem>>, %arg6: memref<2x4x256xf32, #tpu.memory_space<vmem>>) attributes {dimension_semantics = [#tpu.dimension_semantics<parallel>], iteration_bounds = array<i64: 1>, scalar_prefetch = 0 : i64, scratch_operands = 0 : i64, tpu.core_type = #tpu.core_type<tc>, window_params = [{transform_indices = @transform_0, window_bounds = array<i64: 2, 4, 256>}, {pipeline_mode = #tpu.pipeline_mode<synchronous>, transform_indices = @transform_1, window_bounds = array<i64: 3, 4, 4>}, {pipeline_mode = #tpu.pipeline_mode<synchronous>, transform_indices = @transform_2, window_bounds = array<i64: 4, 1>}, {pipeline_mode = #tpu.pipeline_mode<synchronous>, transform_indices = @transform_3, window_bounds = array<i64: 3, 4, 4>}, {pipeline_mode = #tpu.pipeline_mode<synchronous>, transform_indices = @transform_4, window_bounds = array<i64: 4, 1>}, {transform_indices = @transform_5, window_bounds = array<i64: 2, 4, 256>}]} {
    %0 = tpu.iota {dimensions = array<i32: 1>} : vector<4x256xi32>
    %1 = tpu.iota {dimensions = array<i32: 1>} : vector<4x256xi32>
    %c16_i32 = arith.constant 16 : i32
    %c0_i32 = arith.constant 0 : i32
    %2 = arith.cmpi eq, %c16_i32, %c0_i32 : i32
    %c1_i32 = arith.constant 1 : i32
    %3 = arith.select %2, %c1_i32, %c16_i32 : i32
    %4 = vector.broadcast %3 : i32 to vector<4x256xi32>
    %5 = arith.remsi %0, %4 : vector<4x256xi32>
    %c0_i32_0 = arith.constant 0 : i32
    %6 = vector.broadcast %c0_i32_0 : i32 to vector<4x256xi32>
    %7 = arith.cmpi ne, %5, %6 : vector<4x256xi32>
    %c0_i32_1 = arith.constant 0 : i32
    %8 = vector.broadcast %c0_i32_1 : i32 to vector<4x256xi32>
    %9 = arith.cmpi slt, %5, %8 : vector<4x256xi32>
    %c0_i32_2 = arith.constant 0 : i32
    %10 = arith.cmpi slt, %3, %c0_i32_2 : i32
    %11 = vector.broadcast %10 : i1 to vector<4x256xi1>
    %12 = vector.broadcast %11 : vector<4x256xi1> to vector<4x256xi1>
    %13 = arith.xori %9, %12 : vector<4x256xi1>
    %14 = arith.andi %13, %7 : vector<4x256xi1>
    %15 = vector.broadcast %3 : i32 to vector<4x256xi32>
    %16 = arith.addi %5, %15 : vector<4x256xi32>
    %17 = arith.select %14, %16, %5 : vector<4x256xi1>, vector<4x256xi32>
    %c-1_i32 = arith.constant -1 : i32
    %18 = vector.broadcast %c-1_i32 : i32 to vector<4x256xi32>
    %19 = arith.addi %17, %18 : vector<4x256xi32>
    %c0_i32_3 = arith.constant 0 : i32
    %20 = vector.broadcast %c0_i32_3 : i32 to vector<4x256xi32>
    %21 = arith.cmpi sge, %19, %20 : vector<4x256xi32>
    %c-1_i32_4 = arith.constant -1 : i32
    %22 = vector.broadcast %c-1_i32_4 : i32 to vector<4x256xi32>
    %23 = arith.addi %17, %22 : vector<4x256xi32>
    %c16_i32_5 = arith.constant 16 : i32
    %24 = vector.broadcast %c16_i32_5 : i32 to vector<4x256xi32>
    %25 = arith.cmpi slt, %23, %24 : vector<4x256xi32>
    %26 = arith.andi %21, %25 : vector<4x256xi1>
    %c1_i32_6 = arith.constant 1 : i32
    %27 = vector.broadcast %c1_i32_6 : i32 to vector<4x256xi32>
    %28 = arith.addi %17, %27 : vector<4x256xi32>
    %c0_i32_7 = arith.constant 0 : i32
    %29 = vector.broadcast %c0_i32_7 : i32 to vector<4x256xi32>
    %30 = arith.cmpi sge, %28, %29 : vector<4x256xi32>
    %c1_i32_8 = arith.constant 1 : i32
    %31 = vector.broadcast %c1_i32_8 : i32 to vector<4x256xi32>
    %32 = arith.addi %17, %31 : vector<4x256xi32>
    %c16_i32_9 = arith.constant 16 : i32
    %33 = vector.broadcast %c16_i32_9 : i32 to vector<4x256xi32>
    %34 = arith.cmpi slt, %32, %33 : vector<4x256xi32>
    %35 = arith.andi %30, %34 : vector<4x256xi1>
    %c-16_i32 = arith.constant -16 : i32
    %36 = vector.broadcast %c-16_i32 : i32 to vector<4x256xi32>
    %37 = arith.addi %1, %36 : vector<4x256xi32>
    %c0_i32_10 = arith.constant 0 : i32
    %38 = vector.broadcast %c0_i32_10 : i32 to vector<4x256xi32>
    %39 = arith.cmpi sge, %37, %38 : vector<4x256xi32>
    %c-16_i32_11 = arith.constant -16 : i32
    %40 = vector.broadcast %c-16_i32_11 : i32 to vector<4x256xi32>
    %41 = arith.addi %1, %40 : vector<4x256xi32>
    %c256_i32 = arith.constant 256 : i32
    %42 = vector.broadcast %c256_i32 : i32 to vector<4x256xi32>
    %43 = arith.cmpi slt, %41, %42 : vector<4x256xi32>
    %44 = arith.andi %39, %43 : vector<4x256xi1>
    %c16_i32_12 = arith.constant 16 : i32
    %45 = vector.broadcast %c16_i32_12 : i32 to vector<4x256xi32>
    %46 = arith.addi %1, %45 : vector<4x256xi32>
    %c0_i32_13 = arith.constant 0 : i32
    %47 = vector.broadcast %c0_i32_13 : i32 to vector<4x256xi32>
    %48 = arith.cmpi sge, %46, %47 : vector<4x256xi32>
    %c16_i32_14 = arith.constant 16 : i32
    %49 = vector.broadcast %c16_i32_14 : i32 to vector<4x256xi32>
    %50 = arith.addi %1, %49 : vector<4x256xi32>
    %c256_i32_15 = arith.constant 256 : i32
    %51 = vector.broadcast %c256_i32_15 : i32 to vector<4x256xi32>
    %52 = arith.cmpi slt, %50, %51 : vector<4x256xi32>
    %53 = arith.andi %48, %52 : vector<4x256xi1>
    %c0 = arith.constant 0 : index
    %c0_16 = arith.constant 0 : index
    %c0_17 = arith.constant 0 : index
    %54 = vector.load %arg1[%c0, %c0_16, %c0_17] : memref<2x4x256xf32, #tpu.memory_space<vmem>>, vector<1x4x256xf32>
    %55 = vector.shape_cast %54 : vector<1x4x256xf32> to vector<4x256xf32>
    %c1_i32_18 = arith.constant 1 : i32
    %56 = tpu.dynamic_rotate %55 by %c1_i32_18 dim 1 : vector<4x256xf32>, i32 -> vector<4x256xf32>
    %c0_i32_19 = arith.constant 0 : i32
    %57 = arith.sitofp %c0_i32_19 : i32 to f32
    %58 = vector.broadcast %57 : f32 to vector<4x256xf32>
    %59 = arith.select %26, %56, %58 : vector<4x256xi1>, vector<4x256xf32>
    %c0_20 = arith.constant 0 : index
    %c0_21 = arith.constant 0 : index
    %c0_22 = arith.constant 0 : index
    %60 = vector.load %arg2[%c0_20, %c0_21, %c0_22] : memref<3x4x4xf32, #tpu.memory_space<vmem>>, vector<1x4x4xf32>
    %61 = vector.shape_cast %60 : vector<1x4x4xf32> to vector<4x4xf32>
    %cst = arith.constant dense<0.000000e+00> : vector<4x256xf32>
    %62 = tpu.matmul %61, %59, %cst {dimension_numbers = #tpu.dot_dimension_numbers<[1], [0], [0], [1], [0, 0, 1, 1], [], []>} : vector<4x4xf32>, vector<4x256xf32>, vector<4x256xf32> -> vector<4x256xf32>
    %c1 = arith.constant 1 : index
    %c0_23 = arith.constant 0 : index
    %c0_24 = arith.constant 0 : index
    %63 = vector.load %arg2[%c1, %c0_23, %c0_24] : memref<3x4x4xf32, #tpu.memory_space<vmem>>, vector<1x4x4xf32>
    %64 = vector.shape_cast %63 : vector<1x4x4xf32> to vector<4x4xf32>
    %cst_25 = arith.constant dense<0.000000e+00> : vector<4x256xf32>
    %65 = tpu.matmul %64, %55, %cst_25 {dimension_numbers = #tpu.dot_dimension_numbers<[1], [0], [0], [1], [0, 0, 1, 1], [], []>} : vector<4x4xf32>, vector<4x256xf32>, vector<4x256xf32> -> vector<4x256xf32>
    %66 = arith.addf %62, %65 : vector<4x256xf32>
    %c255_i32 = arith.constant 255 : i32
    %67 = tpu.dynamic_rotate %55 by %c255_i32 dim 1 : vector<4x256xf32>, i32 -> vector<4x256xf32>
    %c0_i32_26 = arith.constant 0 : i32
    %68 = arith.sitofp %c0_i32_26 : i32 to f32
    %69 = vector.broadcast %68 : f32 to vector<4x256xf32>
    %70 = arith.select %35, %67, %69 : vector<4x256xi1>, vector<4x256xf32>
    %c2 = arith.constant 2 : index
    %c0_27 = arith.constant 0 : index
    %c0_28 = arith.constant 0 : index
    %71 = vector.load %arg2[%c2, %c0_27, %c0_28] : memref<3x4x4xf32, #tpu.memory_space<vmem>>, vector<1x4x4xf32>
    %72 = vector.shape_cast %71 : vector<1x4x4xf32> to vector<4x4xf32>
    %cst_29 = arith.constant dense<0.000000e+00> : vector<4x256xf32>
    %73 = tpu.matmul %72, %70, %cst_29 {dimension_numbers = #tpu.dot_dimension_numbers<[1], [0], [0], [1], [0, 0, 1, 1], [], []>} : vector<4x4xf32>, vector<4x256xf32>, vector<4x256xf32> -> vector<4x256xf32>
    %74 = arith.addf %66, %73 : vector<4x256xf32>
    %c0_30 = arith.constant 0 : index
    %c0_31 = arith.constant 0 : index
    %75 = vector.load %arg3[%c0_30, %c0_31] : memref<4x1xf32, #tpu.memory_space<vmem>>, vector<4x1xf32>
    %76 = vector.broadcast %75 : vector<4x1xf32> to vector<4x256xf32>
    %77 = arith.addf %74, %76 : vector<4x256xf32>
    %cst_32 = arith.constant 0.000000e+00 : f32
    %78 = vector.broadcast %cst_32 : f32 to vector<4x256xf32>
    %79 = arith.cmpf ogt, %77, %78 : vector<4x256xf32>
    %cst_33 = arith.constant 1.000000e-01 : f32
    %80 = vector.broadcast %cst_33 : f32 to vector<4x256xf32>
    %81 = arith.mulf %80, %77 : vector<4x256xf32>
    %82 = arith.select %79, %77, %81 : vector<4x256xi1>, vector<4x256xf32>
    %c16_i32_34 = arith.constant 16 : i32
    %83 = tpu.dynamic_rotate %82 by %c16_i32_34 dim 1 : vector<4x256xf32>, i32 -> vector<4x256xf32>
    %c0_i32_35 = arith.constant 0 : i32
    %84 = arith.sitofp %c0_i32_35 : i32 to f32
    %85 = vector.broadcast %84 : f32 to vector<4x256xf32>
    %86 = arith.select %44, %83, %85 : vector<4x256xi1>, vector<4x256xf32>
    %c0_36 = arith.constant 0 : index
    %c0_37 = arith.constant 0 : index
    %c0_38 = arith.constant 0 : index
    %87 = vector.load %arg4[%c0_36, %c0_37, %c0_38] : memref<3x4x4xf32, #tpu.memory_space<vmem>>, vector<1x4x4xf32>
    %88 = vector.shape_cast %87 : vector<1x4x4xf32> to vector<4x4xf32>
    %cst_39 = arith.constant dense<0.000000e+00> : vector<4x256xf32>
    %89 = tpu.matmul %88, %86, %cst_39 {dimension_numbers = #tpu.dot_dimension_numbers<[1], [0], [0], [1], [0, 0, 1, 1], [], []>} : vector<4x4xf32>, vector<4x256xf32>, vector<4x256xf32> -> vector<4x256xf32>
    %c1_40 = arith.constant 1 : index
    %c0_41 = arith.constant 0 : index
    %c0_42 = arith.constant 0 : index
    %90 = vector.load %arg4[%c1_40, %c0_41, %c0_42] : memref<3x4x4xf32, #tpu.memory_space<vmem>>, vector<1x4x4xf32>
    %91 = vector.shape_cast %90 : vector<1x4x4xf32> to vector<4x4xf32>
    %cst_43 = arith.constant dense<0.000000e+00> : vector<4x256xf32>
    %92 = tpu.matmul %91, %82, %cst_43 {dimension_numbers = #tpu.dot_dimension_numbers<[1], [0], [0], [1], [0, 0, 1, 1], [], []>} : vector<4x4xf32>, vector<4x256xf32>, vector<4x256xf32> -> vector<4x256xf32>
    %93 = arith.addf %89, %92 : vector<4x256xf32>
    %c240_i32 = arith.constant 240 : i32
    %94 = tpu.dynamic_rotate %82 by %c240_i32 dim 1 : vector<4x256xf32>, i32 -> vector<4x256xf32>
    %c0_i32_44 = arith.constant 0 : i32
    %95 = arith.sitofp %c0_i32_44 : i32 to f32
    %96 = vector.broadcast %95 : f32 to vector<4x256xf32>
    %97 = arith.select %53, %94, %96 : vector<4x256xi1>, vector<4x256xf32>
    %c2_45 = arith.constant 2 : index
    %c0_46 = arith.constant 0 : index
    %c0_47 = arith.constant 0 : index
    %98 = vector.load %arg4[%c2_45, %c0_46, %c0_47] : memref<3x4x4xf32, #tpu.memory_space<vmem>>, vector<1x4x4xf32>
    %99 = vector.shape_cast %98 : vector<1x4x4xf32> to vector<4x4xf32>
    %cst_48 = arith.constant dense<0.000000e+00> : vector<4x256xf32>
    %100 = tpu.matmul %99, %97, %cst_48 {dimension_numbers = #tpu.dot_dimension_numbers<[1], [0], [0], [1], [0, 0, 1, 1], [], []>} : vector<4x4xf32>, vector<4x256xf32>, vector<4x256xf32> -> vector<4x256xf32>
    %101 = arith.addf %93, %100 : vector<4x256xf32>
    %c0_49 = arith.constant 0 : index
    %c0_50 = arith.constant 0 : index
    %102 = vector.load %arg5[%c0_49, %c0_50] : memref<4x1xf32, #tpu.memory_space<vmem>>, vector<4x1xf32>
    %103 = vector.broadcast %102 : vector<4x1xf32> to vector<4x256xf32>
    %104 = arith.addf %101, %103 : vector<4x256xf32>
    %cst_51 = arith.constant 0.000000e+00 : f32
    %105 = vector.broadcast %cst_51 : f32 to vector<4x256xf32>
    %106 = arith.cmpf ogt, %104, %105 : vector<4x256xf32>
    %cst_52 = arith.constant 1.000000e-01 : f32
    %107 = vector.broadcast %cst_52 : f32 to vector<4x256xf32>
    %108 = arith.mulf %107, %104 : vector<4x256xf32>
    %109 = arith.select %106, %104, %108 : vector<4x256xi1>, vector<4x256xf32>
    %c0_53 = arith.constant 0 : index
    %c0_54 = arith.constant 0 : index
    %c0_55 = arith.constant 0 : index
    %110 = vector.load %arg6[%c0_53, %c0_54, %c0_55] : memref<2x4x256xf32, #tpu.memory_space<vmem>>, vector<1x4x256xf32>
    %111 = vector.shape_cast %110 : vector<1x4x256xf32> to vector<4x256xf32>
    %112 = vector.shape_cast %109 : vector<4x256xf32> to vector<1x4x256xf32>
    tpu.vector_store %arg6[%c0_53, %c0_54, %c0_55], %112 {strides = array<i32>} : memref<2x4x256xf32, #tpu.memory_space<vmem>>, vector<1x4x256xf32>,
    %c1_56 = arith.constant 1 : index
    %c0_57 = arith.constant 0 : index
    %c0_58 = arith.constant 0 : index
    %113 = vector.load %arg1[%c1_56, %c0_57, %c0_58] : memref<2x4x256xf32, #tpu.memory_space<vmem>>, vector<1x4x256xf32>
    %114 = vector.shape_cast %113 : vector<1x4x256xf32> to vector<4x256xf32>
    %c1_i32_59 = arith.constant 1 : i32
    %115 = tpu.dynamic_rotate %114 by %c1_i32_59 dim 1 : vector<4x256xf32>, i32 -> vector<4x256xf32>
    %c0_i32_60 = arith.constant 0 : i32
    %116 = arith.sitofp %c0_i32_60 : i32 to f32
    %117 = vector.broadcast %116 : f32 to vector<4x256xf32>
    %118 = arith.select %26, %115, %117 : vector<4x256xi1>, vector<4x256xf32>
    %c0_61 = arith.constant 0 : index
    %c0_62 = arith.constant 0 : index
    %c0_63 = arith.constant 0 : index
    %119 = vector.load %arg2[%c0_61, %c0_62, %c0_63] : memref<3x4x4xf32, #tpu.memory_space<vmem>>, vector<1x4x4xf32>
    %120 = vector.shape_cast %119 : vector<1x4x4xf32> to vector<4x4xf32>
    %cst_64 = arith.constant dense<0.000000e+00> : vector<4x256xf32>
    %121 = tpu.matmul %120, %118, %cst_64 {dimension_numbers = #tpu.dot_dimension_numbers<[1], [0], [0], [1], [0, 0, 1, 1], [], []>} : vector<4x4xf32>, vector<4x256xf32>, vector<4x256xf32> -> vector<4x256xf32>
    %c1_65 = arith.constant 1 : index
    %c0_66 = arith.constant 0 : index
    %c0_67 = arith.constant 0 : index
    %122 = vector.load %arg2[%c1_65, %c0_66, %c0_67] : memref<3x4x4xf32, #tpu.memory_space<vmem>>, vector<1x4x4xf32>
    %123 = vector.shape_cast %122 : vector<1x4x4xf32> to vector<4x4xf32>
    %cst_68 = arith.constant dense<0.000000e+00> : vector<4x256xf32>
    %124 = tpu.matmul %123, %114, %cst_68 {dimension_numbers = #tpu.dot_dimension_numbers<[1], [0], [0], [1], [0, 0, 1, 1], [], []>} : vector<4x4xf32>, vector<4x256xf32>, vector<4x256xf32> -> vector<4x256xf32>
    %125 = arith.addf %121, %124 : vector<4x256xf32>
    %c255_i32_69 = arith.constant 255 : i32
    %126 = tpu.dynamic_rotate %114 by %c255_i32_69 dim 1 : vector<4x256xf32>, i32 -> vector<4x256xf32>
    %c0_i32_70 = arith.constant 0 : i32
    %127 = arith.sitofp %c0_i32_70 : i32 to f32
    %128 = vector.broadcast %127 : f32 to vector<4x256xf32>
    %129 = arith.select %35, %126, %128 : vector<4x256xi1>, vector<4x256xf32>
    %c2_71 = arith.constant 2 : index
    %c0_72 = arith.constant 0 : index
    %c0_73 = arith.constant 0 : index
    %130 = vector.load %arg2[%c2_71, %c0_72, %c0_73] : memref<3x4x4xf32, #tpu.memory_space<vmem>>, vector<1x4x4xf32>
    %131 = vector.shape_cast %130 : vector<1x4x4xf32> to vector<4x4xf32>
    %cst_74 = arith.constant dense<0.000000e+00> : vector<4x256xf32>
    %132 = tpu.matmul %131, %129, %cst_74 {dimension_numbers = #tpu.dot_dimension_numbers<[1], [0], [0], [1], [0, 0, 1, 1], [], []>} : vector<4x4xf32>, vector<4x256xf32>, vector<4x256xf32> -> vector<4x256xf32>
    %133 = arith.addf %125, %132 : vector<4x256xf32>
    %c0_75 = arith.constant 0 : index
    %c0_76 = arith.constant 0 : index
    %134 = vector.load %arg3[%c0_75, %c0_76] : memref<4x1xf32, #tpu.memory_space<vmem>>, vector<4x1xf32>
    %135 = vector.broadcast %134 : vector<4x1xf32> to vector<4x256xf32>
    %136 = arith.addf %133, %135 : vector<4x256xf32>
    %cst_77 = arith.constant 0.000000e+00 : f32
    %137 = vector.broadcast %cst_77 : f32 to vector<4x256xf32>
    %138 = arith.cmpf ogt, %136, %137 : vector<4x256xf32>
    %cst_78 = arith.constant 1.000000e-01 : f32
    %139 = vector.broadcast %cst_78 : f32 to vector<4x256xf32>
    %140 = arith.mulf %139, %136 : vector<4x256xf32>
    %141 = arith.select %138, %136, %140 : vector<4x256xi1>, vector<4x256xf32>
    %c16_i32_79 = arith.constant 16 : i32
    %142 = tpu.dynamic_rotate %141 by %c16_i32_79 dim 1 : vector<4x256xf32>, i32 -> vector<4x256xf32>
    %c0_i32_80 = arith.constant 0 : i32
    %143 = arith.sitofp %c0_i32_80 : i32 to f32
    %144 = vector.broadcast %143 : f32 to vector<4x256xf32>
    %145 = arith.select %44, %142, %144 : vector<4x256xi1>, vector<4x256xf32>
    %c0_81 = arith.constant 0 : index
    %c0_82 = arith.constant 0 : index
    %c0_83 = arith.constant 0 : index
    %146 = vector.load %arg4[%c0_81, %c0_82, %c0_83] : memref<3x4x4xf32, #tpu.memory_space<vmem>>, vector<1x4x4xf32>
    %147 = vector.shape_cast %146 : vector<1x4x4xf32> to vector<4x4xf32>
    %cst_84 = arith.constant dense<0.000000e+00> : vector<4x256xf32>
    %148 = tpu.matmul %147, %145, %cst_84 {dimension_numbers = #tpu.dot_dimension_numbers<[1], [0], [0], [1], [0, 0, 1, 1], [], []>} : vector<4x4xf32>, vector<4x256xf32>, vector<4x256xf32> -> vector<4x256xf32>
    %c1_85 = arith.constant 1 : index
    %c0_86 = arith.constant 0 : index
    %c0_87 = arith.constant 0 : index
    %149 = vector.load %arg4[%c1_85, %c0_86, %c0_87] : memref<3x4x4xf32, #tpu.memory_space<vmem>>, vector<1x4x4xf32>
    %150 = vector.shape_cast %149 : vector<1x4x4xf32> to vector<4x4xf32>
    %cst_88 = arith.constant dense<0.000000e+00> : vector<4x256xf32>
    %151 = tpu.matmul %150, %141, %cst_88 {dimension_numbers = #tpu.dot_dimension_numbers<[1], [0], [0], [1], [0, 0, 1, 1], [], []>} : vector<4x4xf32>, vector<4x256xf32>, vector<4x256xf32> -> vector<4x256xf32>
    %152 = arith.addf %148, %151 : vector<4x256xf32>
    %c240_i32_89 = arith.constant 240 : i32
    %153 = tpu.dynamic_rotate %141 by %c240_i32_89 dim 1 : vector<4x256xf32>, i32 -> vector<4x256xf32>
    %c0_i32_90 = arith.constant 0 : i32
    %154 = arith.sitofp %c0_i32_90 : i32 to f32
    %155 = vector.broadcast %154 : f32 to vector<4x256xf32>
    %156 = arith.select %53, %153, %155 : vector<4x256xi1>, vector<4x256xf32>
    %c2_91 = arith.constant 2 : index
    %c0_92 = arith.constant 0 : index
    %c0_93 = arith.constant 0 : index
    %157 = vector.load %arg4[%c2_91, %c0_92, %c0_93] : memref<3x4x4xf32, #tpu.memory_space<vmem>>, vector<1x4x4xf32>
    %158 = vector.shape_cast %157 : vector<1x4x4xf32> to vector<4x4xf32>
    %cst_94 = arith.constant dense<0.000000e+00> : vector<4x256xf32>
    %159 = tpu.matmul %158, %156, %cst_94 {dimension_numbers = #tpu.dot_dimension_numbers<[1], [0], [0], [1], [0, 0, 1, 1], [], []>} : vector<4x4xf32>, vector<4x256xf32>, vector<4x256xf32> -> vector<4x256xf32>
    %160 = arith.addf %152, %159 : vector<4x256xf32>
    %c0_95 = arith.constant 0 : index
    %c0_96 = arith.constant 0 : index
    %161 = vector.load %arg5[%c0_95, %c0_96] : memref<4x1xf32, #tpu.memory_space<vmem>>, vector<4x1xf32>
    %162 = vector.broadcast %161 : vector<4x1xf32> to vector<4x256xf32>
    %163 = arith.addf %160, %162 : vector<4x256xf32>
    %cst_97 = arith.constant 0.000000e+00 : f32
    %164 = vector.broadcast %cst_97 : f32 to vector<4x256xf32>
    %165 = arith.cmpf ogt, %163, %164 : vector<4x256xf32>
    %cst_98 = arith.constant 1.000000e-01 : f32
    %166 = vector.broadcast %cst_98 : f32 to vector<4x256xf32>
    %167 = arith.mulf %166, %163 : vector<4x256xf32>
    %168 = arith.select %165, %163, %167 : vector<4x256xi1>, vector<4x256xf32>
    %c1_99 = arith.constant 1 : index
    %c0_100 = arith.constant 0 : index
    %c0_101 = arith.constant 0 : index
    %169 = vector.load %arg6[%c1_99, %c0_100, %c0_101] : memref<2x4x256xf32, #tpu.memory_space<vmem>>, vector<1x4x256xf32>
    %170 = vector.shape_cast %169 : vector<1x4x256xf32> to vector<4x256xf32>
    %171 = vector.shape_cast %168 : vector<4x256xf32> to vector<1x4x256xf32>
    tpu.vector_store %arg6[%c1_99, %c0_100, %c0_101], %171 {strides = array<i32>} : memref<2x4x256xf32, #tpu.memory_space<vmem>>, vector<1x4x256xf32>,
    return
  }
  func.func @transform_0(%arg0: i32) -> (i32, i32, i32) {
    %c0_i32 = arith.constant 0 : i32
    %c0_i32_0 = arith.constant 0 : i32
    %c0_i32_1 = arith.constant 0 : i32
    return %arg0, %c0_i32, %c0_i32_0 : i32, i32, i32
  }
  func.func @transform_1(%arg0: i32) -> (i32, i32, i32) {
    %c0_i32 = arith.constant 0 : i32
    %c0_i32_0 = arith.constant 0 : i32
    %c0_i32_1 = arith.constant 0 : i32
    %c0_i32_2 = arith.constant 0 : i32
    return %c0_i32, %c0_i32_0, %c0_i32_1 : i32, i32, i32
  }
  func.func @transform_2(%arg0: i32) -> (i32, i32) {
    %c0_i32 = arith.constant 0 : i32
    %c0_i32_0 = arith.constant 0 : i32
    %c0_i32_1 = arith.constant 0 : i32
    return %c0_i32, %c0_i32_0 : i32, i32
  }
  func.func @transform_3(%arg0: i32) -> (i32, i32, i32) {
    %c0_i32 = arith.constant 0 : i32
    %c0_i32_0 = arith.constant 0 : i32
    %c0_i32_1 = arith.constant 0 : i32
    %c0_i32_2 = arith.constant 0 : i32
    return %c0_i32, %c0_i32_0, %c0_i32_1 : i32, i32, i32
  }
  func.func @transform_4(%arg0: i32) -> (i32, i32) {
    %c0_i32 = arith.constant 0 : i32
    %c0_i32_0 = arith.constant 0 : i32
    %c0_i32_1 = arith.constant 0 : i32
    return %c0_i32, %c0_i32_0 : i32, i32
  }
  func.func @transform_5(%arg0: i32) -> (i32, i32, i32) {
    %c0_i32 = arith.constant 0 : i32
    %c0_i32_0 = arith.constant 0 : i32
    %c0_i32_1 = arith.constant 0 : i32
    return %arg0, %c0_i32, %c0_i32_0 : i32, i32, i32
  }
}

</mosaic_0001>

<bundles_post_ra>
// kernel: cross_conv_forward.1
= control target key start
LH: loop header
LB: loop body
LE: loop exit
PB: predicated region body
PF: predicated region fallthrough
CT: control target
= control target key end

     0   :  { %vm99_vm0 = vcmask 1043456   ;;  %v1281_v1 = vmov 0.0   ;;  %s1282_s20 = smov 1   ;;  %s1283_s21 = smov 127   ;;  %vm95_vm1 = vcmask 31744   ;;  %v1284_v6 = vmov 0   ;;  %s1489_s0 = inlined_call_operand.vmem [shape: f32[2,4,256], index: 0, kind: input, shape index: {}]   ;;  %s1490_s1 = inlined_call_operand.vmem [shape: f32[3,4,4], index: 1, kind: input, shape index: {}]   ;;  %s1491_s2 = inlined_call_operand.vmem [shape: f32[4,1], index: 2, kind: input, shape index: {}]   ;;  %s1492_s3 = inlined_call_operand.vmem [shape: f32[3,4,4], index: 3, kind: input, shape index: {}]   ;;  %s1493_s4 = inlined_call_operand.vmem [shape: f32[4,1], index: 4, kind: input, shape index: {}]   ;;  %s1494_s5 = inlined_call_operand.vmem [shape: f32[2,4,256], index: 5, kind: output, shape index: {}]  }
   0x1   :  { %v79_v0 = vld [vmem:[%s1489_s0] sm:$0xff]  ;;  %168 = vmatprep.mubr.f32.mxu0 %v1281_v1  ;;  %447 = vmatprep.mubr.f32.mxu1 %v1281_v1  ;;  %v1325_v3 = vld [vmem:[%s1489_s0 + $0x8] sm:$0xff]  ;;  %v20_v9 = vlaneseq  ;;  %s1285_s13 = smov 16  }
   0x2   :  { %83 = vrot.lane.b32.xlu0 %v79_v0, %s1282_s20  ;;  %255 = vrot.lane.b32.xlu1 %v79_v0, %s1283_s21  ;;  %v81_v2 = vcombine.high %v79_v0, %v79_v0  ;;  %v1209_v4 = vld [vmem:[%s1490_s1 + $0x4] sm:$0xf]  ;;  %v649_v5 = vcombine.high %v1325_v3, %v1325_v3  ;;  %v348_v7 = vld [vmem:[%s1491_s2] sm:$0xf] }
   0x3   :  { %1277 = vset.pattern.permute.xlu0 %v1284_v6  ;;  %1278 = vset.pattern.permute.xlu1 %v1284_v6  ;;  %v910_v8 = vld [vmem:[%s1491_s2] sm:$0xf]  ;;  %v1344_v10 = vand.u32 127, %v20_v9  ;;  %v1216_v34 = vld [vmem:[%s1490_s1 + $0x8] sm:$0xf] }
   0x4   :  { %1210 = vmatprep.subr.msk.mxu0 %vm99_vm0, %v81_v2  ;;  %v92_v29 = vld [vmem:[%s1490_s1] sm:$0xf]  ;;  %v1232_v40 = vld [vmem:[%s1490_s1 + $0x4] sm:$0xf]  ;;  %v1239_v46 = vld [vmem:[%s1490_s1 + $0x8] sm:$0xf] }
   0x5   :  { %1211 = vmatpush1.msk.msra.mxu0 %vm99_vm0, %v79_v0  ;;  %v1347_v11 = vadd.s32 128, %v1344_v10  ;;  %v27_v12 = vand.u32 15, %v1344_v10  ;;  %vm87_vm2 = vcmp.lt.s32.totalorder %v1344_v10, 1  ;;  %vm259_vm3 = vcmp.lt.s32.totalorder %v1344_v10, 127  ;;  %v659_v44 = vld [vmem:[%s1490_s1] sm:$0xf] }
   0x6   :  { %85 = vrot.lane.b32.xlu0 %v81_v2, %s1282_s20  ;;  %257 = vrot.lane.b32.xlu1 %v81_v2, %s1283_s21  ;;  %v1220_v56 = vld [vmem:[%s1492_s3 + $0x4] sm:$0xf]  ;;  %s1286_s1 = smov 112   ;;  %vm366_vm12 = vcmp.lt.s32.totalorder %v1344_v10, 16  ;;  %vm538_vm14 = vcmp.lt.s32.totalorder %v1344_v10, 112 }
   0x7   :  { %1212 = vmatmul.mubr.msk.f32.vlgmr.msra.gmra.mrb[0].mxu0 %vm95_vm1, %v1209_v4  ;;  %v34_v13 = vand.u32 15, %v1347_v11  ;;  %v47_v14 = vadd.s32 4294967295, %v27_v12  ;;  %v55_v19 = vadd.s32 1, %v27_v12  ;;  %v1185_v4 = vld [vmem:[%s1493_s4] sm:$0xf] }
   0x8   :  { %248 = vmatprep.mubr.f32.mxu0 %v1281_v1 }
   0x9   :  { %v48_v15 = vadd.s32 4294967295, %v34_v13  ;;  %v56_v16 = vadd.s32 1, %v34_v13  ;;  %vm49_vm4 = vcmp.ge.s32.totalorder %v47_v14, 0  ;;  %vm59_vm7 = vcmp.lt.s32.totalorder %v55_v19, 16  ;;  %v371_v13 = vld [vmem:[%s1492_s3] sm:$0xf] }
   0xa   :  { %653 = vrot.lane.b32.xlu1 %v649_v5, %s1282_s20  ;;  %651 = vrot.lane.b32.xlu0 %v1325_v3, %s1282_s20  ;;  %v1227_v19 = vld [vmem:[%s1492_s3 + $0x8] sm:$0xf] }
   0xb   :  { %vm50_vm5 = vcmp.ge.s32.totalorder %v48_v15, 0  ;;  %vm60_vm6 = vcmp.lt.s32.totalorder %v56_v16, 16 }
   0xe   :  { %821 = vrot.lane.b32.xlu1 %v649_v5, %s1283_s21  ;;  %819 = vrot.lane.b32.xlu0 %v1325_v3, %s1283_s21 }
  0x12   :  { %351 = vperm.xlu0 %1277, %v348_v7   ;;  %913 = vperm.xlu1 %1278, %v910_v8   ;;  %v72_v7 = vadd.s32 16, %v1347_v11 }
  0x14   :  { %vm76_vm15 = vcmp.lt.s32.totalorder %v72_v7, 256 }
  0x74   :  { %v84_v17 = vpop.permute.xlu0 %83  ;;  %v256_v18 = vpop.permute.xlu1 %255 }
  0x78   :  { %v86_v20 = vpop.permute.xlu0 %85  ;;  %v258_v21 = vpop.permute.xlu1 %257 }
  0x79   :  { %v88_v22 = vsel %vm87_vm2, %v84_v17, %v86_v20  ;;  %v89_v23 = vsel %vm87_vm2, %v86_v20, %v84_v17  ;;  %v260_v24 = vsel %vm259_vm3, %v256_v18, %v258_v21  ;;  %v261_v25 = vsel %vm259_vm3, %v258_v21, %v256_v18  ;;  %v1243_v20 = vld [vmem:[%s1492_s3 + $0x4] sm:$0xf] }
  0x7a   :  { %v90_v26 = vsel %vm49_vm4, %v89_v23, 0.0  ;;  %v91_v27 = vsel %vm50_vm5, %v88_v22, 0.0  ;;  %v263_v28 = vsel %vm60_vm6, %v261_v25, 0.0  ;;  %v262_v30 = vsel %vm59_vm7, %v260_v24, 0.0  ;;  %v932_v25 = vld [vmem:[%s1492_s3] sm:$0xf] }
  0x7b   :  { %1213 = vmatprep.subr.msk.mxu0 %vm99_vm0, %v91_v27 }
  0x7c   :  { %1214 = vmatpush1.msk.msra.mxu0 %vm99_vm0, %v90_v26  ;;  %v654_v31 = vpop.permute.xlu1 %653  ;;  %v652_v32 = vpop.permute.xlu0 %651 }
  0x7d   :  { %1215 = vmatmul.mubr.msk.f32.vlgmr.msra.gmra.mrb[0].mxu0 %vm95_vm1, %v92_v29  ;;  %1217 = vmatprep.subr.msk.mxu0 %vm99_vm0, %v263_v28  ;;  %v655_v33 = vsel %vm87_vm2, %v652_v32, %v654_v31  ;;  %v656_v37 = vsel %vm87_vm2, %v654_v31, %v652_v32  ;;  %v1250_v32 = vld [vmem:[%s1492_s3 + $0x8] sm:$0xf] }
  0x7e   :  { %1218 = vmatpush1.msk.msra.mxu0 %vm99_vm0, %v262_v30  ;;  %339 = vmatprep.mubr.f32.mxu0 %v1281_v1  ;;  %v658_v38 = vsel %vm50_vm5, %v655_v33, 0.0  ;;  %v657_v41 = vsel %vm49_vm4, %v656_v37, 0.0 }
  0x7f   :  { %1233 = vmatprep.subr.msk.mxu0 %vm99_vm0, %v649_v5  ;;  %v63_v5 = vadd.s32 4294967280, %v1344_v10 }
  0x80   :  { %v822_v35 = vpop.permute.xlu1 %821  ;;  %v820_v36 = vpop.permute.xlu0 %819 }
  0x81   :  { %v824_v39 = vsel %vm259_vm3, %v822_v35, %v820_v36  ;;  %v823_v43 = vsel %vm259_vm3, %v820_v36, %v822_v35  ;;  %vm65_vm13 = vcmp.ge.s32.totalorder %v63_v5, 0 }
  0x82   :  { %v826_v42 = vsel %vm60_vm6, %v824_v39, 0.0  ;;  %v825_v45 = vsel %vm59_vm7, %v823_v43, 0.0 }
  0x85   :  { %1219 = vmatmul.mubr.msk.f32.vlgmr.msra.gmra.mrb[0].mxu0 %vm95_vm1, %v1216_v34 }
  0x86   :  { %1234 = vmatpush1.msk.msra.mxu0 %vm99_vm0, %v1325_v3  ;;  %732 = vmatprep.mubr.f32.mxu0 %v1281_v1  ;;  %v627_v3 = vld [vmem:[%s1493_s4] sm:$0xf] }
  0x87   :  { %1236 = vmatprep.subr.msk.mxu0 %vm99_vm0, %v658_v38 }
  0x89   :  { %1235 = vmatmul.mubr.msk.f32.vlgmr.msra.gmra.mrb[2].mxu0 %vm95_vm1, %v1232_v40 }
  0x8a   :  { %1237 = vmatpush1.msk.msra.mxu0 %vm99_vm0, %v657_v41  ;;  %812 = vmatprep.mubr.f32.mxu0 %v1281_v1 }
  0x8b   :  { %1240 = vmatprep.subr.msk.mxu0 %vm99_vm0, %v826_v42 }
  0x91   :  { %1238 = vmatmul.mubr.msk.f32.vlgmr.msra.gmra.mrb[2].mxu0 %vm95_vm1, %v659_v44  ;;  %v352_v47 = vpop.permute.xlu0 %351  ;;  %v914_v57 = vpop.permute.xlu1 %913 }
  0x92   :  { %1241 = vmatpush1.msk.msra.mxu0 %vm99_vm0, %v825_v45  ;;  %901 = vmatprep.mubr.f32.mxu0 %v1281_v1 }
  0x99   :  { %1242 = vmatmul.mubr.msk.f32.vlgmr.msra.gmra.mrb[2].mxu0 %vm95_vm1, %v1239_v46 }
 0x158   :  { %v341_v48 = vpop.f32.mrb[0].mxu0 }
 0x159   :  { %v354_v49 = vadd.f32 %v352_v47, %v341_v48  ;;  %v343_v50 = vpop.f32.mrb[1].mxu0 }
 0x15a   :  { %v355_v51 = vadd.f32 %v352_v47, %v343_v50 }
 0x15b   :  { %v358_v52 = vmul.f32 0.1, %v354_v49  ;;  %vm356_vm8 = vcmp.gt.f32.partialorder %v354_v49, 0.0 }
 0x15c   :  { %v359_v53 = vmul.f32 0.1, %v355_v51  ;;  %vm357_vm9 = vcmp.gt.f32.partialorder %v355_v51, 0.0 }
 0x15d   :  { %v360_v54 = vsel %vm356_vm8, %v354_v49, %v358_v52 }
 0x15e   :  { %362 = vrot.lane.b32.xlu1 %v360_v54, %s1285_s13  ;;  %v361_v55 = vsel %vm357_vm9, %v355_v51, %v359_v53 }
 0x15f   :  { %364 = vrot.lane.b32.xlu0 %v361_v55, %s1285_s13  ;;  %1221 = vmatprep.subr.msk.mxu1 %vm99_vm0, %v361_v55 }
 0x160   :  { %1222 = vmatpush1.msk.msra.mxu1 %vm99_vm0, %v360_v54 }
 0x161   :  { %1223 = vmatmul.mubr.msk.f32.vlgmr.msra.gmra.mrb[0].mxu1 %vm95_vm1, %v1220_v56 }
 0x162   :  { %534 = vrot.lane.b32.xlu1 %v360_v54, %s1286_s1  ;;  %527 = vmatprep.mubr.f32.mxu1 %v1281_v1 }
 0x163   :  { %536 = vrot.lane.b32.xlu0 %v361_v55, %s1286_s1 }
 0x16c   :  { %v903_v58 = vpop.f32.mrb[2].mxu0 }
 0x16d   :  { %v916_v59 = vadd.f32 %v914_v57, %v903_v58  ;;  %v905_v60 = vpop.f32.mrb[3].mxu0 }
 0x16e   :  { %v917_v61 = vadd.f32 %v914_v57, %v905_v60 }
 0x16f   :  { %v920_v62 = vmul.f32 0.1, %v916_v59  ;;  %vm918_vm10 = vcmp.gt.f32.partialorder %v916_v59, 0.0 }
 0x170   :  { %v921_v63 = vmul.f32 0.1, %v917_v61  ;;  %vm919_vm11 = vcmp.gt.f32.partialorder %v917_v61, 0.0 }
 0x171   :  { %v922_v0 = vsel %vm918_vm10, %v916_v59, %v920_v62 }
 0x172   :  { %924 = vrot.lane.b32.xlu1 %v922_v0, %s1285_s13  ;;  %v923_v2 = vsel %vm919_vm11, %v917_v61, %v921_v63 }
 0x173   :  { %926 = vrot.lane.b32.xlu0 %v923_v2, %s1285_s13 }
 0x176   :  { %1094 = vrot.lane.b32.xlu1 %v922_v0, %s1286_s1 }
 0x177   :  { %1096 = vrot.lane.b32.xlu0 %v923_v2, %s1286_s1 }
 0x17a   :  { %630 = vperm.xlu1 %1278, %v627_v3  }
 0x17b   :  { %1188 = vperm.xlu0 %1277, %v1185_v4  }
 0x1d0   :  { %v363_v6 = vpop.permute.xlu1 %362 }
 0x1d1   :  { %v365_v8 = vpop.permute.xlu0 %364 }
 0x1d2   :  { %v367_v9 = vsel %vm366_vm12, %v363_v6, %v365_v8  ;;  %v368_v12 = vsel %vm366_vm12, %v365_v8, %v363_v6 }
 0x1d3   :  { %v369_v14 = vsel %vm65_vm13, %v368_v12, 0.0  ;;  %1224 = vmatprep.subr.msk.mxu1 %vm99_vm0, %v367_v9 }
 0x1d4   :  { %v535_v15 = vpop.permute.xlu1 %534  ;;  %1225 = vmatpush1.msk.msra.mxu1 %vm99_vm0, %v369_v14 }
 0x1d5   :  { %v537_v11 = vpop.permute.xlu0 %536  ;;  %1226 = vmatmul.mubr.msk.f32.vlgmr.msra.gmra.mrb[0].mxu1 %vm95_vm1, %v371_v13 }
 0x1d6   :  { %v540_v16 = vsel %vm538_vm14, %v537_v11, %v535_v15  ;;  %618 = vmatprep.mubr.f32.mxu1 %v1281_v1  ;;  %v539_v18 = vsel %vm538_vm14, %v535_v15, %v537_v11 }
 0x1d7   :  { %v542_v17 = vsel %vm76_vm15, %v540_v16, 0.0 }
 0x1d8   :  { %1228 = vmatprep.subr.msk.mxu1 %vm99_vm0, %v542_v17 }
 0x1d9   :  { %1229 = vmatpush1.msk.msra.mxu1 %vm99_vm0, %v539_v18 }
 0x1da   :  { %1244 = vmatprep.subr.msk.mxu1 %vm99_vm0, %v923_v2 }
 0x1dd   :  { %1230 = vmatmul.mubr.msk.f32.vlgmr.msra.gmra.mrb[0].mxu1 %vm95_vm1, %v1227_v19 }
 0x1de   :  { %1245 = vmatpush1.msk.msra.mxu1 %vm99_vm0, %v922_v0  ;;  %1007 = vmatprep.mubr.f32.mxu1 %v1281_v1 }
 0x1e1   :  { %1246 = vmatmul.mubr.msk.f32.vlgmr.msra.gmra.mrb[2].mxu1 %vm95_vm1, %v1243_v20 }
 0x1e2   :  { %1087 = vmatprep.mubr.f32.mxu1 %v1281_v1 }
 0x1e4   :  { %v925_v21 = vpop.permute.xlu1 %924 }
 0x1e5   :  { %v927_v22 = vpop.permute.xlu0 %926 }
 0x1e6   :  { %v928_v23 = vsel %vm366_vm12, %v925_v21, %v927_v22  ;;  %v929_v24 = vsel %vm366_vm12, %v927_v22, %v925_v21 }
 0x1e7   :  { %v930_v26 = vsel %vm65_vm13, %v929_v24, 0.0  ;;  %1247 = vmatprep.subr.msk.mxu1 %vm99_vm0, %v928_v23 }
 0x1e8   :  { %v1095_v27 = vpop.permute.xlu1 %1094  ;;  %1248 = vmatpush1.msk.msra.mxu1 %vm99_vm0, %v930_v26 }
 0x1e9   :  { %v1097_v28 = vpop.permute.xlu0 %1096  ;;  %1249 = vmatmul.mubr.msk.f32.vlgmr.msra.gmra.mrb[2].mxu1 %vm95_vm1, %v932_v25 }
 0x1ea   :  { %v1099_v29 = vsel %vm538_vm14, %v1097_v28, %v1095_v27  ;;  %1176 = vmatprep.mubr.f32.mxu1 %v1281_v1  ;;  %v1098_v31 = vsel %vm538_vm14, %v1095_v27, %v1097_v28 }
 0x1eb   :  { %v1101_v30 = vsel %vm76_vm15, %v1099_v29, 0.0 }
 0x1ec   :  { %1251 = vmatprep.subr.msk.mxu1 %vm99_vm0, %v1101_v30 }
 0x1ed   :  { %1252 = vmatpush1.msk.msra.mxu1 %vm99_vm0, %v1098_v31 }
 0x1f1   :  { %1253 = vmatmul.mubr.msk.f32.vlgmr.msra.gmra.mrb[2].mxu1 %vm95_vm1, %v1250_v32 }
 0x1f9   :  { %v631_v33 = vpop.permute.xlu1 %630 }
 0x1fa   :  { %v1189_v41 = vpop.permute.xlu0 %1188 }
 0x2b0   :  { %v620_v34 = vpop.f32.mrb[0].mxu1 }
 0x2b1   :  { %v633_v35 = vadd.f32 %v631_v33, %v620_v34  ;;  %v622_v36 = vpop.f32.mrb[1].mxu1 }
 0x2b2   :  { %v634_v1 = vadd.f32 %v631_v33, %v622_v36 }
 0x2b3   :  { %vm635_vm2 = vcmp.gt.f32.partialorder %v633_v35, 0.0  ;;  %v637_v37 = vmul.f32 0.1, %v633_v35 }
 0x2b4   :  { %vm636_vm3 = vcmp.gt.f32.partialorder %v634_v1, 0.0  ;;  %v638_v10 = vmul.f32 0.1, %v634_v1 }
 0x2b5   :  { %v639_v38 = vsel %vm635_vm2, %v633_v35, %v637_v37 }
 0x2b6   :  { %v640_v39 = vsel %vm636_vm3, %v634_v1, %v638_v10 }
 0x2b7   :  { %v643_v40 = vcombine.low %v639_v38, %v640_v39 }
 0x2b9   :  { %645 = vst [vmem:[%s1494_s5] sm:$0xff] %v643_v40 }
 0x2c4   :  { %v1178_v42 = vpop.f32.mrb[2].mxu1 }
 0x2c5   :  { %v1191_v43 = vadd.f32 %v1189_v41, %v1178_v42  ;;  %v1180_v44 = vpop.f32.mrb[3].mxu1 }
 0x2c6   :  { %v1192_v45 = vadd.f32 %v1189_v41, %v1180_v44 }
 0x2c7   :  { %vm1193_vm0 = vcmp.gt.f32.partialorder %v1191_v43, 0.0  ;;  %v1195_v46 = vmul.f32 0.1, %v1191_v43 }
 0x2c8   :  { %vm1194_vm1 = vcmp.gt.f32.partialorder %v1192_v45, 0.0  ;;  %v1196_v47 = vmul.f32 0.1, %v1192_v45 }
 0x2c9   :  { %v1197_v48 = vsel %vm1193_vm0, %v1191_v43, %v1195_v46 }
 0x2ca   :  { %v1198_v49 = vsel %vm1194_vm1, %v1192_v45, %v1196_v47 }
 0x2cb   :  { %v1201_v50 = vcombine.low %v1197_v48, %v1198_v49 }
 0x2cd   :  { %1254 = vst [vmem:[%s1494_s5 + $0x8] sm:$0xff] %v1201_v50 }

</bundles_post_ra>
